<compile_context>
chip_gen: v7x
topology: tpu7x:2x2x1
jax: 0.10.0
libtpu: 0.0.40
codegen_flags: <defaults>
</compile_context>

<pallas_src>
import functools

import jax
import jax.numpy as jnp
from jax.experimental import pallas as pl
from jax.experimental.pallas import tpu as pltpu

EPS = 1e-5  # PyTorch BatchNorm1d default eps


def _round_up(v: int, m: int) -> int:
    return ((v + m - 1) // m) * m


def _dense_block_kernel(x_ref, xres_ref, g1_ref, bt1_ref, w1t_ref,
                        g2_ref, bt2_ref, w2t_ref, b2_ref,
                        out_ref, a_ref, acc_ref, *, n_real):
    k = pl.program_id(1)
    inv_n = jnp.float32(1.0 / n_real)

    @pl.when(k == 0)
    def _():
        # ---- bn1 (training-mode batch stats) folded into one FMA, then ReLU ----
        x = x_ref[...]                                   # [Np, Fp] f32, resident
        sum_x = jnp.sum(x, axis=0, keepdims=True)
        sum_x2 = jnp.sum(x * x, axis=0, keepdims=True)
        mean1 = sum_x * inv_n
        var1 = jnp.maximum(sum_x2 * inv_n - mean1 * mean1, 0.0)
        scale1 = g1_ref[...] * jax.lax.rsqrt(var1 + EPS)
        shift1 = bt1_ref[...] - mean1 * scale1
        a = jnp.maximum(x * scale1 + shift1, 0.0)
        if n_real < x.shape[0]:
            # Zero the batch-padding rows so bn2's batch statistics stay exact.
            rows = jax.lax.broadcasted_iota(jnp.int32, x.shape, 0)
            a = jnp.where(rows < n_real, a, 0.0)
        a_ref[...] = a.astype(a_ref.dtype)               # bf16 for the MXU
        acc_ref[...] = jnp.zeros_like(acc_ref)

    # ---- linear1, output-column tile k: bf16 x bf16 -> f32 on the MXU ----
    # NOTE: b1 omitted on purpose -- bn2 subtracts the batch mean right after, so a
    # per-feature bias constant across the batch cancels exactly.
    h = jnp.dot(a_ref[...], w1t_ref[...], preferred_element_type=jnp.float32)

    # ---- bn2 on this column tile, folded into one FMA, then ReLU ----
    sum_h = jnp.sum(h, axis=0, keepdims=True)
    sum_h2 = jnp.sum(h * h, axis=0, keepdims=True)
    mean2 = sum_h * inv_n
    var2 = jnp.maximum(sum_h2 * inv_n - mean2 * mean2, 0.0)
    scale2 = g2_ref[...] * jax.lax.rsqrt(var2 + EPS)
    shift2 = bt2_ref[...] - mean2 * scale2
    p = jnp.maximum(h * scale2 + shift2, 0.0).astype(w2t_ref.dtype)   # bf16

    # ---- linear2 partial product for K-tile k, accumulated in f32 scratch ----
    acc_ref[...] += jnp.dot(p, w2t_ref[...], preferred_element_type=jnp.float32)

    # ---- finalize this output-column tile: bias2 + residual ----
    @pl.when(k == pl.num_programs(1) - 1)
    def _():
        out_ref[...] = (acc_ref[...] + b2_ref[...] + xres_ref[...]).astype(out_ref.dtype)


def prepare_params(w1, b1, g1, bt1, w2, b2, g2, bt2):
    """One-time (outside jit) param prep: transpose, pad to lane-dense Fp, cast weights to bf16.

    b1 is accepted for API parity with the PyTorch module but is unused: bn2's batch-mean
    subtraction cancels a bias that is constant across the batch.
    """
    del b1
    f = w1.shape[0]
    fp = _round_up(f, 128)
    pad = fp - f

    def row(v):
        return jnp.pad(v.astype(jnp.float32), (0, pad)).reshape(1, fp)

    def wt(w):
        return jnp.pad(w.astype(jnp.float32).T, ((0, pad), (0, pad))).astype(jnp.bfloat16)

    return (wt(w1), row(g1), row(bt1), row(g2), row(bt2), wt(w2), row(b2))


@functools.partial(jax.jit, static_argnames=("tile",))
def dense_block(x, w1t, g1, bt1, g2, bt2, w2t, b2, *, tile=None):
    """x: [N, F] float; prepared params from prepare_params(). Returns [N, F]."""
    n, f = x.shape
    fp = w1t.shape[0]
    np_ = _round_up(max(n, 1), 16)                 # bf16-friendly sublane padding
    if tile is None:
        tile = 256 if fp % 256 == 0 else 128       # 256-aligned tiles for v6e/v7x MXU
    tj = tk = int(tile)
    assert fp % 128 == 0 and fp % tj == 0 and fp % tk == 0

    xp = x.astype(jnp.float32)
    if (np_, fp) != (n, f):
        xp = jnp.pad(xp, ((0, np_ - n), (0, fp - f)))

    jt, kt = fp // tj, fp // tk

    # Explicit scoped-VMEM budget with headroom (default is only 16/32 MiB); capped well
    # below the smallest physical VMEM (v7x: 64 MiB).
    need = (
        2 * np_ * fp * 4          # resident x (counted double for safety)
        + np_ * fp * 2            # a scratch (bf16)
        + np_ * tj * 4            # f32 accumulator scratch
        + 2 * np_ * tj * 4        # residual x tile (double-buffered)
        + 2 * np_ * tj * 4        # output tile (double-buffered)
        + 2 * fp * tk * 2         # W1^T tiles (Buffered(2), bf16)
        + 2 * tk * tj * 2         # W2^T tiles (Buffered(2), bf16)
        + 16 * fp * 4             # small [1, F] params
    )
    vmem_limit = int(min(max(2 * need + (2 << 20), 16 << 20), 48 << 20))

    kernel = functools.partial(_dense_block_kernel, n_real=n)

    out = pl.pallas_call(
        kernel,
        out_shape=jax.ShapeDtypeStruct((np_, fp), jnp.float32),
        grid_spec=pltpu.PrefetchScalarGridSpec(
            num_scalar_prefetch=0,
            grid=(jt, kt),
            in_specs=[
                pl.BlockSpec((np_, fp), lambda j, k: (0, 0)),      # x (full, resident)
                pl.BlockSpec((np_, tj), lambda j, k: (0, j)),      # x residual tile
                pl.BlockSpec((1, fp), lambda j, k: (0, 0)),        # bn1 gamma
                pl.BlockSpec((1, fp), lambda j, k: (0, 0)),        # bn1 beta
                pl.BlockSpec((fp, tk), lambda j, k: (0, k),
                             pipeline_mode=pl.Buffered(2)),        # W1^T column tile (streamed)
                pl.BlockSpec((1, tk), lambda j, k: (0, k)),        # bn2 gamma tile
                pl.BlockSpec((1, tk), lambda j, k: (0, k)),        # bn2 beta tile
                pl.BlockSpec((tk, tj), lambda j, k: (k, j),
                             pipeline_mode=pl.Buffered(2)),        # W2^T (K, out) tile (streamed)
                pl.BlockSpec((1, tj), lambda j, k: (0, j)),        # bias2 tile
            ],
            out_specs=pl.BlockSpec((np_, tj), lambda j, k: (0, j)),
            scratch_shapes=[
                pltpu.VMEM((np_, fp), jnp.bfloat16),   # a = relu(bn1(x)), bf16
                pltpu.VMEM((np_, tj), jnp.float32),    # linear2 accumulator
            ],
        ),
        compiler_params=pltpu.CompilerParams(
            dimension_semantics=("parallel", "arbitrary"),
            vmem_limit_bytes=vmem_limit,
        ),
    )(xp, xp, g1, bt1, w1t, g2, bt2, w2t, b2)

    return out[:n, :f].astype(x.dtype)


# ---------------------------------------------------------------------------
# References for correctness checking.
# ---------------------------------------------------------------------------
def _bn_train(h, g, bt):
    m = jnp.mean(h, axis=0, keepdims=True)
    v = jnp.mean((h - m) ** 2, axis=0, keepdims=True)
    return (h - m) / jnp.sqrt(v + EPS) * g + bt


def _reference_f32(x, w1, b1, g1, bt1, w2, b2, g2, bt2):
    out = jnp.maximum(_bn_train(x, g1, bt1), 0.0)
    out = out @ w1.T + b1
    out = jnp.maximum(_bn_train(out, g2, bt2), 0.0)
    out = out @ w2.T + b2
    return out + x


def _reference_bf16_matmul(x, w1, b1, g1, bt1, w2, b2, g2, bt2):
    # Mirrors the kernel's numerics: matmul operands in bf16, f32 accumulation.
    a = jnp.maximum(_bn_train(x, g1, bt1), 0.0).astype(jnp.bfloat16)
    h = jnp.dot(a, w1.T.astype(jnp.bfloat16), preferred_element_type=jnp.float32) + b1
    p = jnp.maximum(_bn_train(h, g2, bt2), 0.0).astype(jnp.bfloat16)
    o = jnp.dot(p, w2.T.astype(jnp.bfloat16), preferred_element_type=jnp.float32) + b2
    return o + x


if __name__ == "__main__":
    def run_case(num_features, batch, tile=None):
        key = jax.random.PRNGKey(0)
        ks = jax.random.split(key, 9)
        bound = 1.0 / (num_features ** 0.5)

        x = jax.random.normal(ks[0], (batch, num_features), jnp.float32)
        w1 = jax.random.uniform(ks[1], (num_features, num_features), jnp.float32, -bound, bound)
        b1 = jax.random.uniform(ks[2], (num_features,), jnp.float32, -bound, bound)
        w2 = jax.random.uniform(ks[3], (num_features, num_features), jnp.float32, -bound, bound)
        b2 = jax.random.uniform(ks[4], (num_features,), jnp.float32, -bound, bound)
        g1 = 1.0 + 0.1 * jax.random.normal(ks[5], (num_features,), jnp.float32)
        bt1 = 0.1 * jax.random.normal(ks[6], (num_features,), jnp.float32)
        g2 = 1.0 + 0.1 * jax.random.normal(ks[7], (num_features,), jnp.float32)
        bt2 = 0.1 * jax.random.normal(ks[8], (num_features,), jnp.float32)

        params = prepare_params(w1, b1, g1, bt1, w2, b2, g2, bt2)  # one-time prep
        out = dense_block(x, *params, tile=tile)
        out = jax.block_until_ready(out)
        assert out.shape == (batch, num_features)

        ref_match = _reference_bf16_matmul(x, w1, b1, g1, bt1, w2, b2, g2, bt2)
        ref_f32 = _reference_f32(x, w1, b1, g1, bt1, w2, b2, g2, bt2)
        assert jnp.allclose(out, ref_match, atol=5e-3, rtol=5e-3), \
            float(jnp.max(jnp.abs(out - ref_match)))
        assert jnp.allclose(out, ref_f32, atol=1e-1, rtol=1e-1), \
            float(jnp.max(jnp.abs(out - ref_f32)))

    # Small case matching the module's scale: F=32 pads to one lane-dense 128-wide tile,
    # batch=8 pads to 16 rows (exercises the batch-padding mask); grid = (1, 1).
    run_case(num_features=32, batch=8)
    # Case exercising the streaming/accumulation path: Fp=256 with tile=128
    # -> grid (2, 2): parallel output-tile axis + arbitrary K-reduction axis.
    run_case(num_features=256, batch=16, tile=128)

    print("KERNEL_OK")
</pallas_src>

<mosaic_0001>
module attributes {stable_mosaic.version = 11 : i64} {
  func.func @_dense_block_kernel(%arg0: i32, %arg1: i32, %arg2: memref<16x128xf32, #tpu.memory_space<vmem>>, %arg3: memref<16x128xf32, #tpu.memory_space<vmem>>, %arg4: memref<1x128xf32, #tpu.memory_space<vmem>>, %arg5: memref<1x128xf32, #tpu.memory_space<vmem>>, %arg6: memref<128x128xbf16, #tpu.memory_space<vmem>>, %arg7: memref<1x128xf32, #tpu.memory_space<vmem>>, %arg8: memref<1x128xf32, #tpu.memory_space<vmem>>, %arg9: memref<128x128xbf16, #tpu.memory_space<vmem>>, %arg10: memref<1x128xf32, #tpu.memory_space<vmem>>, %arg11: memref<16x128xf32, #tpu.memory_space<vmem>>, %arg12: memref<16x128xbf16, #tpu.memory_space<vmem>>, %arg13: memref<16x128xf32, #tpu.memory_space<vmem>>) attributes {dimension_semantics = [#tpu.dimension_semantics<parallel>, #tpu.dimension_semantics<arbitrary>], iteration_bounds = array<i64: 1, 1>, scalar_prefetch = 0 : i64, scratch_operands = 2 : i64, tpu.core_type = #tpu.core_type<tc>, window_params = [{pipeline_mode = #tpu.pipeline_mode<synchronous>, transform_indices = @transform_0, window_bounds = array<i64: 16, 128>}, {transform_indices = @transform_1, window_bounds = array<i64: 16, 128>}, {pipeline_mode = #tpu.pipeline_mode<synchronous>, transform_indices = @transform_2, window_bounds = array<i64: 1, 128>}, {pipeline_mode = #tpu.pipeline_mode<synchronous>, transform_indices = @transform_3, window_bounds = array<i64: 1, 128>}, {pipeline_mode = #tpu.pipeline_mode<double_buffered>, transform_indices = @transform_4, window_bounds = array<i64: 128, 128>}, {transform_indices = @transform_5, window_bounds = array<i64: 1, 128>}, {transform_indices = @transform_6, window_bounds = array<i64: 1, 128>}, {pipeline_mode = #tpu.pipeline_mode<double_buffered>, transform_indices = @transform_7, window_bounds = array<i64: 128, 128>}, {transform_indices = @transform_8, window_bounds = array<i64: 1, 128>}, {transform_indices = @transform_9, window_bounds = array<i64: 16, 128>}]} {
    %c0_i32 = arith.constant 0 : i32
    %0 = arith.cmpi eq, %arg1, %c0_i32 : i32
    %1 = arith.extui %0 : i1 to i32
    %cst = arith.constant 1.250000e-01 : f32
    %c0_i32_0 = arith.constant 0 : i32
    %2 = arith.cmpi ne, %1, %c0_i32_0 : i32
    scf.if %2 {
      %c0_25 = arith.constant 0 : index
      %c0_26 = arith.constant 0 : index
      %42 = vector.load %arg2[%c0_25, %c0_26] : memref<16x128xf32, #tpu.memory_space<vmem>>, vector<16x128xf32>
      %cst_27 = arith.constant dense<0.000000e+00> : vector<128xf32>
      %43 = vector.multi_reduction <add>, %42, %cst_27 [0] : vector<16x128xf32> to vector<128xf32>
      %44 = vector.shape_cast %43 : vector<128xf32> to vector<1x128xf32>
      %45 = arith.mulf %42, %42 : vector<16x128xf32>
      %cst_28 = arith.constant dense<0.000000e+00> : vector<128xf32>
      %46 = vector.multi_reduction <add>, %45, %cst_28 [0] : vector<16x128xf32> to vector<128xf32>
      %47 = vector.shape_cast %46 : vector<128xf32> to vector<1x128xf32>
      %48 = vector.broadcast %cst : f32 to vector<1x128xf32>
      %49 = arith.mulf %44, %48 : vector<1x128xf32>
      %50 = vector.broadcast %cst : f32 to vector<1x128xf32>
      %51 = arith.mulf %47, %50 : vector<1x128xf32>
      %52 = arith.mulf %49, %49 : vector<1x128xf32>
      %53 = arith.subf %51, %52 : vector<1x128xf32>
      %cst_29 = arith.constant 0.000000e+00 : f32
      %54 = vector.broadcast %cst_29 : f32 to vector<1x128xf32>
      %55 = arith.maximumf %53, %54 : vector<1x128xf32>
      %c0_30 = arith.constant 0 : index
      %c0_31 = arith.constant 0 : index
      %56 = vector.load %arg4[%c0_30, %c0_31] : memref<1x128xf32, #tpu.memory_space<vmem>>, vector<1x128xf32>
      %cst_32 = arith.constant 9.99999974E-6 : f32
      %57 = vector.broadcast %cst_32 : f32 to vector<1x128xf32>
      %58 = arith.addf %55, %57 : vector<1x128xf32>
      %59 = math.rsqrt %58 : vector<1x128xf32>
      %60 = arith.mulf %56, %59 : vector<1x128xf32>
      %c0_33 = arith.constant 0 : index
      %c0_34 = arith.constant 0 : index
      %61 = vector.load %arg5[%c0_33, %c0_34] : memref<1x128xf32, #tpu.memory_space<vmem>>, vector<1x128xf32>
      %62 = arith.mulf %49, %60 : vector<1x128xf32>
      %63 = arith.subf %61, %62 : vector<1x128xf32>
      %64 = vector.broadcast %60 : vector<1x128xf32> to vector<16x128xf32>
      %65 = arith.mulf %42, %64 : vector<16x128xf32>
      %66 = vector.broadcast %63 : vector<1x128xf32> to vector<16x128xf32>
      %67 = arith.addf %65, %66 : vector<16x128xf32>
      %cst_35 = arith.constant 0.000000e+00 : f32
      %68 = vector.broadcast %cst_35 : f32 to vector<16x128xf32>
      %69 = arith.maximumf %67, %68 : vector<16x128xf32>
      %70 = tpu.iota {dimensions = array<i32: 0>} : vector<16x128xi32>
      %c8_i32 = arith.constant 8 : i32
      %71 = vector.broadcast %c8_i32 : i32 to vector<16x128xi32>
      %72 = arith.cmpi slt, %70, %71 : vector<16x128xi32>
      %cst_36 = arith.constant 0.000000e+00 : f32
      %73 = vector.broadcast %cst_36 : f32 to vector<16x128xf32>
      %74 = arith.select %72, %69, %73 : vector<16x128xi1>, vector<16x128xf32>
      %75 = arith.truncf %74 : vector<16x128xf32> to vector<16x128xbf16>
      %c0_37 = arith.constant 0 : index
      %c0_38 = arith.constant 0 : index
      %76 = vector.load %arg12[%c0_37, %c0_38] : memref<16x128xbf16, #tpu.memory_space<vmem>>, vector<16x128xbf16>
      tpu.vector_store %arg12[%c0_37, %c0_38], %75 {strides = array<i32>} : memref<16x128xbf16, #tpu.memory_space<vmem>>, vector<16x128xbf16>,
      %cst_39 = arith.constant 0.000000e+00 : f32
      %77 = vector.broadcast %cst_39 : f32 to vector<16x128xf32>
      %c0_40 = arith.constant 0 : index
      %c0_41 = arith.constant 0 : index
      %78 = vector.load %arg13[%c0_40, %c0_41] : memref<16x128xf32, #tpu.memory_space<vmem>>, vector<16x128xf32>
      tpu.vector_store %arg13[%c0_40, %c0_41], %77 {strides = array<i32>} : memref<16x128xf32, #tpu.memory_space<vmem>>, vector<16x128xf32>,
    } else {
    }
    %c0 = arith.constant 0 : index
    %c0_1 = arith.constant 0 : index
    %3 = vector.load %arg12[%c0, %c0_1] : memref<16x128xbf16, #tpu.memory_space<vmem>>, vector<16x128xbf16>
    %c0_2 = arith.constant 0 : index
    %c0_3 = arith.constant 0 : index
    %4 = vector.load %arg6[%c0_2, %c0_3] : memref<128x128xbf16, #tpu.memory_space<vmem>>, vector<128x128xbf16>
    %cst_4 = arith.constant dense<0.000000e+00> : vector<16x128xf32>
    %5 = tpu.matmul %3, %4, %cst_4 {dimension_numbers = #tpu.dot_dimension_numbers<[1], [0], [0], [1], [0, 0, 1, 1], [], []>} : vector<16x128xbf16>, vector<128x128xbf16>, vector<16x128xf32> -> vector<16x128xf32>
    %cst_5 = arith.constant dense<0.000000e+00> : vector<128xf32>
    %6 = vector.multi_reduction <add>, %5, %cst_5 [0] : vector<16x128xf32> to vector<128xf32>
    %7 = vector.shape_cast %6 : vector<128xf32> to vector<1x128xf32>
    %8 = arith.mulf %5, %5 : vector<16x128xf32>
    %cst_6 = arith.constant dense<0.000000e+00> : vector<128xf32>
    %9 = vector.multi_reduction <add>, %8, %cst_6 [0] : vector<16x128xf32> to vector<128xf32>
    %10 = vector.shape_cast %9 : vector<128xf32> to vector<1x128xf32>
    %cst_7 = arith.constant 1.250000e-01 : f32
    %11 = vector.broadcast %cst_7 : f32 to vector<1x128xf32>
    %12 = arith.mulf %7, %11 : vector<1x128xf32>
    %cst_8 = arith.constant 1.250000e-01 : f32
    %13 = vector.broadcast %cst_8 : f32 to vector<1x128xf32>
    %14 = arith.mulf %10, %13 : vector<1x128xf32>
    %15 = arith.mulf %12, %12 : vector<1x128xf32>
    %16 = arith.subf %14, %15 : vector<1x128xf32>
    %cst_9 = arith.constant 0.000000e+00 : f32
    %17 = vector.broadcast %cst_9 : f32 to vector<1x128xf32>
    %18 = arith.maximumf %16, %17 : vector<1x128xf32>
    %c0_10 = arith.constant 0 : index
    %c0_11 = arith.constant 0 : index
    %19 = vector.load %arg7[%c0_10, %c0_11] : memref<1x128xf32, #tpu.memory_space<vmem>>, vector<1x128xf32>
    %cst_12 = arith.constant 9.99999974E-6 : f32
    %20 = vector.broadcast %cst_12 : f32 to vector<1x128xf32>
    %21 = arith.addf %18, %20 : vector<1x128xf32>
    %22 = math.rsqrt %21 : vector<1x128xf32>
    %23 = arith.mulf %19, %22 : vector<1x128xf32>
    %c0_13 = arith.constant 0 : index
    %c0_14 = arith.constant 0 : index
    %24 = vector.load %arg8[%c0_13, %c0_14] : memref<1x128xf32, #tpu.memory_space<vmem>>, vector<1x128xf32>
    %25 = arith.mulf %12, %23 : vector<1x128xf32>
    %26 = arith.subf %24, %25 : vector<1x128xf32>
    %27 = vector.broadcast %23 : vector<1x128xf32> to vector<16x128xf32>
    %28 = arith.mulf %5, %27 : vector<16x128xf32>
    %29 = vector.broadcast %26 : vector<1x128xf32> to vector<16x128xf32>
    %30 = arith.addf %28, %29 : vector<16x128xf32>
    %cst_15 = arith.constant 0.000000e+00 : f32
    %31 = vector.broadcast %cst_15 : f32 to vector<16x128xf32>
    %32 = arith.maximumf %30, %31 : vector<16x128xf32>
    %33 = arith.truncf %32 : vector<16x128xf32> to vector<16x128xbf16>
    %c0_16 = arith.constant 0 : index
    %c0_17 = arith.constant 0 : index
    %34 = vector.load %arg13[%c0_16, %c0_17] : memref<16x128xf32, #tpu.memory_space<vmem>>, vector<16x128xf32>
    %c0_18 = arith.constant 0 : index
    %c0_19 = arith.constant 0 : index
    %35 = vector.load %arg9[%c0_18, %c0_19] : memref<128x128xbf16, #tpu.memory_space<vmem>>, vector<128x128xbf16>
    %cst_20 = arith.constant dense<0.000000e+00> : vector<16x128xf32>
    %36 = tpu.matmul %33, %35, %cst_20 {dimension_numbers = #tpu.dot_dimension_numbers<[1], [0], [0], [1], [0, 0, 1, 1], [], []>} : vector<16x128xbf16>, vector<128x128xbf16>, vector<16x128xf32> -> vector<16x128xf32>
    %37 = arith.addf %34, %36 : vector<16x128xf32>
    %c0_21 = arith.constant 0 : index
    %c0_22 = arith.constant 0 : index
    %38 = vector.load %arg13[%c0_21, %c0_22] : memref<16x128xf32, #tpu.memory_space<vmem>>, vector<16x128xf32>
    tpu.vector_store %arg13[%c0_21, %c0_22], %37 {strides = array<i32>} : memref<16x128xf32, #tpu.memory_space<vmem>>, vector<16x128xf32>,
    %c0_i32_23 = arith.constant 0 : i32
    %39 = arith.cmpi eq, %arg1, %c0_i32_23 : i32
    %40 = arith.extui %39 : i1 to i32
    %c0_i32_24 = arith.constant 0 : i32
    %41 = arith.cmpi ne, %40, %c0_i32_24 : i32
    scf.if %41 {
      %c0_25 = arith.constant 0 : index
      %c0_26 = arith.constant 0 : index
      %42 = vector.load %arg13[%c0_25, %c0_26] : memref<16x128xf32, #tpu.memory_space<vmem>>, vector<16x128xf32>
      %c0_27 = arith.constant 0 : index
      %c0_28 = arith.constant 0 : index
      %43 = vector.load %arg10[%c0_27, %c0_28] : memref<1x128xf32, #tpu.memory_space<vmem>>, vector<1x128xf32>
      %44 = vector.broadcast %43 : vector<1x128xf32> to vector<16x128xf32>
      %45 = arith.addf %42, %44 : vector<16x128xf32>
      %c0_29 = arith.constant 0 : index
      %c0_30 = arith.constant 0 : index
      %46 = vector.load %arg3[%c0_29, %c0_30] : memref<16x128xf32, #tpu.memory_space<vmem>>, vector<16x128xf32>
      %47 = arith.addf %45, %46 : vector<16x128xf32>
      %c0_31 = arith.constant 0 : index
      %c0_32 = arith.constant 0 : index
      %48 = vector.load %arg11[%c0_31, %c0_32] : memref<16x128xf32, #tpu.memory_space<vmem>>, vector<16x128xf32>
      tpu.vector_store %arg11[%c0_31, %c0_32], %47 {strides = array<i32>} : memref<16x128xf32, #tpu.memory_space<vmem>>, vector<16x128xf32>,
    } else {
    }
    return
  }
  func.func @transform_0(%arg0: i32, %arg1: i32) -> (i32, i32) {
    %c0_i32 = arith.constant 0 : i32
    %c0_i32_0 = arith.constant 0 : i32
    %c0_i32_1 = arith.constant 0 : i32
    return %c0_i32, %c0_i32_0 : i32, i32
  }
  func.func @transform_1(%arg0: i32, %arg1: i32) -> (i32, i32) {
    %c0_i32 = arith.constant 0 : i32
    %c0_i32_0 = arith.constant 0 : i32
    return %c0_i32, %arg0 : i32, i32
  }
  func.func @transform_2(%arg0: i32, %arg1: i32) -> (i32, i32) {
    %c0_i32 = arith.constant 0 : i32
    %c0_i32_0 = arith.constant 0 : i32
    %c0_i32_1 = arith.constant 0 : i32
    return %c0_i32, %c0_i32_0 : i32, i32
  }
  func.func @transform_3(%arg0: i32, %arg1: i32) -> (i32, i32) {
    %c0_i32 = arith.constant 0 : i32
    %c0_i32_0 = arith.constant 0 : i32
    %c0_i32_1 = arith.constant 0 : i32
    return %c0_i32, %c0_i32_0 : i32, i32
  }
  func.func @transform_4(%arg0: i32, %arg1: i32) -> (i32, i32) {
    %c0_i32 = arith.constant 0 : i32
    %c0_i32_0 = arith.constant 0 : i32
    return %c0_i32, %arg1 : i32, i32
  }
  func.func @transform_5(%arg0: i32, %arg1: i32) -> (i32, i32) {
    %c0_i32 = arith.constant 0 : i32
    %c0_i32_0 = arith.constant 0 : i32
    return %c0_i32, %arg1 : i32, i32
  }
  func.func @transform_6(%arg0: i32, %arg1: i32) -> (i32, i32) {
    %c0_i32 = arith.constant 0 : i32
    %c0_i32_0 = arith.constant 0 : i32
    return %c0_i32, %arg1 : i32, i32
  }
  func.func @transform_7(%arg0: i32, %arg1: i32) -> (i32, i32) {
    %c0_i32 = arith.constant 0 : i32
    return %arg1, %arg0 : i32, i32
  }
  func.func @transform_8(%arg0: i32, %arg1: i32) -> (i32, i32) {
    %c0_i32 = arith.constant 0 : i32
    %c0_i32_0 = arith.constant 0 : i32
    return %c0_i32, %arg0 : i32, i32
  }
  func.func @transform_9(%arg0: i32, %arg1: i32) -> (i32, i32) {
    %c0_i32 = arith.constant 0 : i32
    %c0_i32_0 = arith.constant 0 : i32
    return %c0_i32, %arg0 : i32, i32
  }
}

</mosaic_0001>

<bundles_post_ra>
// kernel: dense_block.1
= control target key start
LH: loop header
LB: loop body
LE: loop exit
PB: predicated region body
PF: predicated region fallthrough
CT: control target
= control target key end

     0   :  { %14 = vsyncpa [#allocation5], 0  ;;  %s701_s0 = inlined_call_operand.vmem [shape: f32[16,128], index: 0, kind: input, shape index: {}, may-alias: {0,1}]   ;;  %s702_s1 = inlined_call_operand.vmem [shape: f32[16,128], index: 1, kind: input, shape index: {}, may-alias: {0,1}]   ;;  %s703_s2 = inlined_call_operand.vmem [shape: f32[1,128], index: 2, kind: input, shape index: {}]   ;;  %s704_s3 = inlined_call_operand.vmem [shape: f32[1,128], index: 3, kind: input, shape index: {}]   ;;  %s705_s4 = inlined_call_operand.hbm [shape: bf16[128,128], index: 4, kind: input, shape index: {}]   ;;  %s706_s5 = inlined_call_operand.vmem [shape: f32[1,128], index: 5, kind: input, shape index: {}]   ;;  %s707_s6 = inlined_call_operand.vmem [shape: f32[1,128], index: 6, kind: input, shape index: {}]   ;;  %s708_s7 = inlined_call_operand.hbm [shape: bf16[128,128], index: 7, kind: input, shape index: {}]   ;;  %s709_s8 = inlined_call_operand.vmem [shape: f32[1,128], index: 8, kind: input, shape index: {}]   ;;  %s710_s9 = inlined_call_operand.vmem [shape: f32[16,128], index: 9, kind: output, shape index: {}]  }
   0x1   :  { %15 = vsyncpa [#allocation7], 0  ;;  %s563_s30 = smov [#allocation4]   ;;  %s515_s13 = scalar_lea.hbm %s705_s4, 1024 }
   0x2   :  { %s29_s10 = sshll.u32 %s563_s30, 4  ;;  %p516_p0 = scmp.ne.s32.totalorder %s705_s4, %s515_s13  ;;  %s30_s10 = int_to_ptr.vmem [resolvable:$true] %s29_s10 }
   0x3   :  { %p519_p1 = scmp.lt.u32.totalorder %s515_s13, %s705_s4 }
   0x5   :  { %p521_p2 = pnand %p519_p1, %p516_p0 }
   0x7   :  { %524 = shalt.err (!%p521_p2)
}
   0x8   :  { %s525_s18 = scalar_lea.vmem %s30_s10, 1024  ;;  %p530_p4 = scmp.lt.s32.totalorder %s30_s10, %s30_s10 }
   0x9   :  { %p526_p3 = scmp.ne.s32.totalorder %s30_s10, %s525_s18  ;;  %p531_p5 = scmp.lt.s32.totalorder %s525_s18, %s525_s18 }
   0xb   :  { %p532_p6 = por %p531_p5, %p530_p4 }
   0xd   :  { %p533_p7 = pnand %p532_p6, %p526_p3 }
   0xf   :  { %536 = shalt.err (!%p533_p7)
}
  0x10   :  { %s564_s19 = smov 64   ;;  %s565_s20 = smov 4  }
  0x11   :  { %35 = dma.hbm_to_vmem [thread:$0]  %s705_s4, 1024, %s30_s10, [#allocation5], %s564_s19, %s564_s19, %s565_s20  }
  0x12   :  { %s566_s23 = smov [#allocation6]   ;;  %s537_s27 = scalar_lea.hbm %s708_s7, 1024 }
  0x13   :  { %s45_s24 = sshll.u32 %s566_s23, 4  ;;  %p538_p8 = scmp.ne.s32.totalorder %s708_s7, %s537_s27  ;;  %s46_s24 = int_to_ptr.vmem [resolvable:$true] %s45_s24 }
  0x14   :  { %p541_p9 = scmp.lt.u32.totalorder %s537_s27, %s708_s7 }
  0x16   :  { %p543_p10 = pnand %p541_p9, %p538_p8 }
  0x18   :  { %546 = shalt.err (!%p543_p10)
}
  0x19   :  { %s547_s12 = scalar_lea.vmem %s46_s24, 1024  ;;  %p552_p12 = scmp.lt.s32.totalorder %s46_s24, %s46_s24 }
  0x1a   :  { %p548_p11 = scmp.ne.s32.totalorder %s46_s24, %s547_s12  ;;  %p553_p13 = scmp.lt.s32.totalorder %s547_s12, %s547_s12 }
  0x1c   :  { %p554_p0 = por %p553_p13, %p552_p12 }
  0x1e   :  { %p555_p1 = pnand %p554_p0, %p548_p11 }
  0x20   :  { %558 = shalt.err (!%p555_p1)
}
  0x21   :  { %51 = dma.hbm_to_vmem [thread:$0]  %s708_s7, 1024, %s46_s24, [#allocation7], %s564_s19, %s564_s19, %s565_s20  }
  0x22   :  { %559 = dma.done.wait [#allocation5], 1024  }
  0x23   :  { %560 = vsyncadd [#allocation5], 4294966272 }
  0x24   :  { %561 = dma.done.wait [#allocation7], 1024  }
  0x25   :  { %562 = vsyncadd [#allocation7], 4294966272  ;;  %v567_v0 = vmov 0.0   ;;  %vm568_vm0 = vmmov 0   ;;  %v495_v1 = vld [vmem:[#allocation4] sm:$0xff]   ;;  %v496_v2 = vld [vmem:[#allocation4 + $0x8] sm:$0xff]   ;;  %v96_v33 = vlaneseq }
  0x26   :  { %449 = vmatprep.subr.bf16.mxu0 %v567_v0  ;;  %465 = vmatprep.mubr.msk.bf16.mxu0 %vm568_vm0, %v567_v0  ;;  %v497_v3 = vld [vmem:[#allocation4 + $0x10] sm:$0xff]   ;;  %v65_v4 = vld [vmem:[%s701_s0] sm:$0xff]  ;;  %v66_v5 = vld [vmem:[%s701_s0 + $0x8] sm:$0xff] }
  0x27   :  { %469 = vmatprep.subr.bf16.mxu1 %v567_v0  ;;  %485 = vmatprep.mubr.msk.bf16.mxu1 %vm568_vm0, %v567_v0  ;;  %v498_v6 = vld [vmem:[#allocation4 + $0x18] sm:$0xff]   ;;  %v67_v7 = vadd.f32 %v66_v5, %v65_v4  ;;  %v74_v8 = vmul.f32 %v65_v4, %v65_v4  ;;  %v75_v9 = vmul.f32 %v66_v5, %v66_v5  ;;  %v499_v12 = vld [vmem:[#allocation4 + $0x20] sm:$0xff]   ;;  %v500_v19 = vld [vmem:[#allocation4 + $0x28] sm:$0xff]   ;;  %v97_v34 = vshrl.u32 %v96_v33, 7 }
  0x28   :  { %450 = vmatpush3.bf16.msra.mxu0 %v495_v1  ;;  %v501_v24 = vld [vmem:[#allocation4 + $0x30] sm:$0xff]   ;;  %v502_v29 = vld [vmem:[#allocation4 + $0x38] sm:$0xff]   ;;  %v88_v35 = vld [vmem:[%s703_s2] sm:$0x1] }
  0x29   :  { %451 = vmatprep.subr.bf16.mxu0 %v567_v0  ;;  %v68_v10 = vrot.slane %v67_v7, 4  ;;  %v76_v11 = vadd.f32 %v75_v9, %v74_v8  ;;  %v663_v36 = vsub.s32 0, %v97_v34  ;;  %v92_v39 = vld [vmem:[%s704_s3] sm:$0x1]  ;;  %v504_v49 = vld [vmem:[#allocation6 + $0x8] sm:$0xff]   ;;  %v505_v50 = vld [vmem:[#allocation6 + $0x10] sm:$0xff]  }
  0x2a   :  { %v503_v48 = vld [vmem:[#allocation6] sm:$0xff]   ;;  %v506_v51 = vld [vmem:[#allocation6 + $0x18] sm:$0xff]   ;;  %v508_v53 = vld [vmem:[#allocation6 + $0x28] sm:$0xff]  }
  0x2b   :  { %v69_v13 = vadd.f32 %v68_v10, %v67_v7  ;;  %v77_v14 = vrot.slane %v76_v11, 4  ;;  %470 = vmatpush3.bf16.msra.mxu1 %v503_v48  ;;  %v507_v52 = vld [vmem:[#allocation6 + $0x20] sm:$0xff]   ;;  %v509_v54 = vld [vmem:[#allocation6 + $0x30] sm:$0xff]   ;;  %v510_v55 = vld [vmem:[#allocation6 + $0x38] sm:$0xff]  }
  0x2c   :  { %452 = vmatpush3.bf16.msra.mxu0 %v496_v2  ;;  %471 = vmatprep.subr.bf16.mxu1 %v567_v0  ;;  %v430_v33 = vld [vmem:[%s709_s8] ss:$0 sm:$0xff] }
  0x2d   :  { %453 = vmatprep.subr.bf16.mxu0 %v567_v0  ;;  %v70_v15 = vrot.slane %v69_v13, 2  ;;  %v78_v16 = vadd.f32 %v77_v14, %v76_v11 }
  0x2f   :  { %v71_v17 = vadd.f32 %v70_v15, %v69_v13  ;;  %v79_v18 = vrot.slane %v78_v16, 2  ;;  %472 = vmatpush3.bf16.msra.mxu1 %v504_v49 }
  0x30   :  { %454 = vmatpush3.bf16.msra.mxu0 %v497_v3  ;;  %473 = vmatprep.subr.bf16.mxu1 %v567_v0 }
  0x31   :  { %455 = vmatprep.subr.bf16.mxu0 %v567_v0  ;;  %v72_v20 = vrot.slane %v71_v17, 1  ;;  %v80_v21 = vadd.f32 %v79_v18, %v78_v16  ;;  %v251_v18 = vld [vmem:[%s706_s5] sm:$0x1] }
  0x33   :  { %v73_v22 = vadd.f32 %v72_v20, %v71_v17  ;;  %v81_v23 = vrot.slane %v80_v21, 1  ;;  %474 = vmatpush3.bf16.msra.mxu1 %v505_v50 }
  0x34   :  { %456 = vmatpush3.bf16.msra.mxu0 %v498_v6  ;;  %475 = vmatprep.subr.bf16.mxu1 %v567_v0 }
  0x35   :  { %457 = vmatprep.subr.bf16.mxu0 %v567_v0  ;;  %v82_v25 = vadd.f32 %v81_v23, %v80_v21  ;;  %v83_v26 = vmul.f32 0.125, %v73_v22  ;;  %v255_v21 = vld [vmem:[%s707_s6] sm:$0x1] }
  0x37   :  { %v84_v27 = vmul.f32 0.125, %v82_v25  ;;  %v85_v28 = vmul.f32 %v83_v26, %v83_v26  ;;  %476 = vmatpush3.bf16.msra.mxu1 %v506_v51 }
  0x38   :  { %458 = vmatpush3.bf16.msra.mxu0 %v499_v12  ;;  %477 = vmatprep.subr.bf16.mxu1 %v567_v0 }
  0x39   :  { %459 = vmatprep.subr.bf16.mxu0 %v567_v0  ;;  %v86_v30 = vsub.f32 %v84_v27, %v85_v28 }
  0x3b   :  { %v87_v31 = vmax.f32 %v86_v30, 0.0  ;;  %478 = vmatpush3.bf16.msra.mxu1 %v507_v52 }
  0x3c   :  { %460 = vmatpush3.bf16.msra.mxu0 %v500_v19  ;;  %479 = vmatprep.subr.bf16.mxu1 %v567_v0 }
  0x3d   :  { %461 = vmatprep.subr.bf16.mxu0 %v567_v0  ;;  %v89_v32 = vadd.f32 1e-05, %v87_v31 }
  0x3f   :  { %511 = vrsqrt.f32 %v89_v32  ;;  %480 = vmatpush3.bf16.msra.mxu1 %v508_v53 }
  0x40   :  { %462 = vmatpush3.bf16.msra.mxu0 %v501_v24  ;;  %481 = vmatprep.subr.bf16.mxu1 %v567_v0 }
  0x41   :  { %463 = vmatprep.subr.bf16.mxu0 %v567_v0 }
  0x43   :  { %482 = vmatpush3.bf16.msra.mxu1 %v509_v54 }
  0x44   :  { %464 = vmatpush3.bf16.msra.mxu0 %v502_v29  ;;  %483 = vmatprep.subr.bf16.mxu1 %v567_v0 }
  0x47   :  { %484 = vmatpush3.bf16.msra.mxu1 %v510_v55 }
  0x49   :  { %v512_v37 = vpop.eup %511 }
  0x4a   :  { %v91_v38 = vmul.f32 %v512_v37, %v88_v35  ;;  %v402_v35 = vld [vmem:[%s702_s1] sm:$0xff] }
  0x4c   :  { %v93_v40 = vmul.f32 %v91_v38, %v83_v26  ;;  %v99_v41 = vrot.slane %v91_v38, %v663_v36 }
  0x4e   :  { %v94_v42 = vsub.f32 %v92_v39, %v93_v40  ;;  %v101_v43 = vmul.f32 %v99_v41, %v65_v4 }
  0x50   :  { %v107_v44 = vrot.slane %v94_v42, %v663_v36 }
  0x52   :  { %v109_v45 = vadd.f32 %v107_v44, %v101_v43 }
  0x54   :  { %v111_v46 = vmax.f32 %v109_v45, 0.0 }
  0x56   :  { %v120_v47 = vpack.c.bf16 %v567_v0, %v111_v46 }
  0x58   :  { %466 = vmatmul.mubr.bf16.vlgmr.msra.gmra.mrb[0].mxu0 %v120_v47 }
 0x12b   :  { %v223_v56 = vpop.f32.mrb[0].mxu0 }
 0x12c   :  { %v467_v57 = vpop.f32.mrb[1].mxu0  ;;  %v237_v59 = vmul.f32 %v223_v56, %v223_v56 }
 0x12d   :  { %v226_v58 = vpop.f32.mrb[2].mxu0 }
 0x12e   :  { %v230_v60 = vadd.f32 %v226_v58, %v223_v56  ;;  %v238_v61 = vmul.f32 %v226_v58, %v226_v58  ;;  %v468_v62 = vpop.f32.mrb[3].mxu0 }
 0x130   :  { %v231_v63 = vrot.slane %v230_v60, 4  ;;  %v239_v1 = vadd.f32 %v238_v61, %v237_v59 }
 0x132   :  { %v232_v2 = vadd.f32 %v231_v63, %v230_v60  ;;  %v240_v3 = vrot.slane %v239_v1, 4 }
 0x134   :  { %v233_v4 = vrot.slane %v232_v2, 2  ;;  %v241_v5 = vadd.f32 %v240_v3, %v239_v1 }
 0x136   :  { %v234_v6 = vadd.f32 %v233_v4, %v232_v2  ;;  %v242_v7 = vrot.slane %v241_v5, 2 }
 0x138   :  { %v235_v8 = vrot.slane %v234_v6, 1  ;;  %v243_v9 = vadd.f32 %v242_v7, %v241_v5 }
 0x13a   :  { %v236_v0 = vadd.f32 %v235_v8, %v234_v6  ;;  %v244_v10 = vrot.slane %v243_v9, 1 }
 0x13c   :  { %v245_v11 = vadd.f32 %v244_v10, %v243_v9  ;;  %v246_v12 = vmul.f32 0.125, %v236_v0 }
 0x13e   :  { %v247_v13 = vmul.f32 0.125, %v245_v11  ;;  %v248_v14 = vmul.f32 %v246_v12, %v246_v12 }
 0x140   :  { %v249_v15 = vsub.f32 %v247_v13, %v248_v14 }
 0x142   :  { %v250_v16 = vmax.f32 %v249_v15, 0.0 }
 0x144   :  { %v252_v17 = vadd.f32 1e-05, %v250_v16 }
 0x146   :  { %513 = vrsqrt.f32 %v252_v17 }
 0x150   :  { %v514_v19 = vpop.eup %513 }
 0x151   :  { %v254_v20 = vmul.f32 %v514_v19, %v251_v18 }
 0x153   :  { %v256_v22 = vmul.f32 %v254_v20, %v246_v12  ;;  %v262_v23 = vrot.slane %v254_v20, %v663_v36 }
 0x155   :  { %v257_v24 = vsub.f32 %v255_v21, %v256_v22  ;;  %v264_v25 = vmul.f32 %v262_v23, %v223_v56  ;;  %v265_v26 = vmul.f32 %v262_v23, %v226_v58 }
 0x157   :  { %v270_v27 = vrot.slane %v257_v24, %v663_v36  ;;  %v403_v36 = vld [vmem:[%s702_s1 + $0x8] sm:$0xff] }
 0x159   :  { %v273_v28 = vadd.f32 %v270_v27, %v265_v26  ;;  %v272_v29 = vadd.f32 %v270_v27, %v264_v25 }
 0x15b   :  { %v274_v30 = vmax.f32 %v272_v29, 0.0  ;;  %v275_v31 = vmax.f32 %v273_v28, 0.0 }
 0x15d   :  { %v276_v32 = vpack.c.bf16 %v275_v31, %v274_v30 }
 0x15f   :  { %486 = vmatmul.mubr.bf16.vlgmr.msra.gmra.mrb[0].mxu1 %v276_v32 }
 0x232   :  { %v377_v34 = vpop.f32.mrb[0].mxu1 }
 0x233   :  { %v400_v37 = vadd.f32 %v430_v33, %v377_v34  ;;  %v487_v38 = vpop.f32.mrb[1].mxu1 }
 0x234   :  { %v380_v39 = vpop.f32.mrb[2].mxu1 }
 0x235   :  { %v404_v40 = vadd.f32 %v402_v35, %v400_v37  ;;  %v401_v41 = vadd.f32 %v430_v33, %v380_v39  ;;  %v488_v42 = vpop.f32.mrb[3].mxu1 }
 0x237   :  { %406 = vst [vmem:[%s710_s9] sm:$0xff] %v404_v40  ;;  %v405_v43 = vadd.f32 %v403_v36, %v401_v41 }
 0x239   :  { %407 = vst [vmem:[%s710_s9 + $0x8] sm:$0xff] %v405_v43 }
 0x23a   :  { %412 = vsyncpa [#allocation5], 1 }
 0x23b   :  { %413 = vsyncpa [#allocation7], 1 }

</bundles_post_ra>
